<compile_context>
chip_gen: v5e
topology: v5e:2x2
jax: 0.10.0
libtpu: 0.0.40
codegen_flags: <defaults>
</compile_context>

<pallas_src>
import functools

import jax
import jax.numpy as jnp
import numpy as np
from jax.experimental import pallas as pl
from jax.experimental.pallas import tpu as pltpu


def _round_up(x: int, m: int) -> int:
    return ((x + m - 1) // m) * m


def _loss_sm_kernel(x_ref, w_ref, out_ref, acc_ref, sum_ref, *, scale):
    j = pl.program_id(0)            # frequency-tile index
    k = pl.program_id(1)            # K (time-sample) tile index -- reduction
    nj = pl.num_programs(0)
    nk = pl.num_programs(1)

    @pl.when(jnp.logical_and(j == 0, k == 0))
    def _():
        sum_ref[0] = jnp.float32(0.0)

    @pl.when(k == 0)
    def _():
        acc_ref[...] = jnp.zeros_like(acc_ref)

    # (2B, tk) @ (tk, tf) -> f32 accumulation on the MXU.
    acc_ref[...] += jnp.dot(x_ref[...], w_ref[...],
                            preferred_element_type=jnp.float32)

    @pl.when(k == nk - 1)
    def _():
        acc = acc_ref[...]                      # (2B, tf) f32
        half = acc.shape[0] // 2
        # rows [:half] = pred spectral coeffs, rows [half:] = ref coeffs;
        # cos columns -> real part, sin columns -> (-imag); abs drops signs.
        diff = jnp.abs(jnp.abs(acc[:half, :]) - jnp.abs(acc[half:, :]))
        sum_ref[0] += jnp.sum(diff)

    @pl.when(jnp.logical_and(j == nj - 1, k == nk - 1))
    def _():
        out_ref[0, 0] = sum_ref[0] * jnp.float32(scale)


@functools.lru_cache(maxsize=8)
def _dft_basis(n: int, k_pad: int, f_pad: int, dtype_name: str) -> jax.Array:
    """Real-DFT basis [cos | sin], zero-padded to (k_pad, 2*f_pad)."""
    f = n // 2 + 1
    nn = np.arange(n, dtype=np.float64)[:, None]           # (N, 1)
    kk = np.arange(f, dtype=np.float64)[None, :]            # (1, F)
    ang = 2.0 * np.pi * nn * kk / float(n)
    w = np.zeros((k_pad, 2 * f_pad), dtype=np.float32)
    w[:n, :f] = np.cos(ang)
    w[:n, f_pad:f_pad + f] = np.sin(ang)
    return jnp.asarray(w, dtype=jnp.dtype(dtype_name))


@functools.partial(jax.jit, static_argnames=("compute_dtype",))
def loss_sm(pred_wave: jax.Array, ref_wave: jax.Array,
            *, compute_dtype=jnp.float32) -> jax.Array:
    """Equivalent of Loss_SM.forward; rfft is taken over the last axis."""
    assert pred_wave.shape == ref_wave.shape
    N = pred_wave.shape[-1]
    F = N // 2 + 1
    pred2 = pred_wave.reshape(-1, N)
    ref2 = ref_wave.reshape(-1, N)
    B = pred2.shape[0]

    b_pad = _round_up(B, 8)            # sublane-aligned batch rows
    f_pad = _round_up(F, 128)          # lane-aligned frequency dim
    two_f = 2 * f_pad                  # [cos | sin] columns
    k_pad = _round_up(N, 128)          # MXU-aligned contraction dim

    # Largest aligned tiles <= 512: every double-buffered input block stays
    # ~<= 1 MiB, safe at default scoped VMEM on v5e / v6e / v7x.
    tf = max(t for t in (512, 256, 128) if two_f % t == 0)
    tk = max(t for t in (512, 256, 128) if k_pad % t == 0)

    w = _dft_basis(N, k_pad, f_pad, jnp.dtype(compute_dtype).name)

    def _prep(a):
        a = a.astype(compute_dtype)
        # Zero padding is a no-op for the loss: padded rows give |0-0| = 0
        # and padded K columns multiply zero basis rows.
        return jnp.pad(a, ((0, b_pad - B), (0, k_pad - N)))

    x = jnp.concatenate([_prep(pred2), _prep(ref2)], axis=0)   # (2*b_pad, k_pad)

    scale = 0.5 / float(B * F)          # true element count, not padded

    grid = (two_f // tf, k_pad // tk)   # reduction axis (K) innermost

    out = pl.pallas_call(
        functools.partial(_loss_sm_kernel, scale=scale),
        out_shape=jax.ShapeDtypeStruct((1, 1), jnp.float32),
        grid=grid,
        in_specs=[
            pl.BlockSpec((2 * b_pad, tk), lambda j, k: (0, k)),  # stacked waves
            pl.BlockSpec((tk, tf), lambda j, k: (k, j)),         # [cos|sin] basis
        ],
        out_specs=pl.BlockSpec(memory_space=pltpu.MemorySpace.SMEM),
        scratch_shapes=[
            pltpu.VMEM((2 * b_pad, tf), jnp.float32),   # matmul accumulator over K
            pltpu.SMEM((1,), jnp.float32),              # running loss sum
        ],
        compiler_params=pltpu.CompilerParams(
            # Both axes accumulate into the single scalar -> "arbitrary".
            dimension_semantics=("arbitrary", "arbitrary"),
        ),
    )(x, w)
    return out[0, 0]


def _reference_loss_sm(pred_wave, ref_wave):
    # Pure-JAX reference mirroring the PyTorch module.
    pred_stft = jnp.fft.rfft(pred_wave)
    ref_stft = jnp.fft.rfft(ref_wave)
    loss1 = jnp.mean(jnp.abs(jnp.abs(pred_stft.real) - jnp.abs(ref_stft.real)))
    loss2 = jnp.mean(jnp.abs(jnp.abs(pred_stft.imag) - jnp.abs(ref_stft.imag)))
    return (loss1 + loss2) / 2


if __name__ == "__main__":
    key = jax.random.PRNGKey(0)
    k1, k2 = jax.random.split(key)
    B, N = 8, 128          # small batch of waveforms, seq length 128
    pred_wave = jax.random.normal(k1, (B, N), dtype=jnp.float32)
    ref_wave = jax.random.normal(k2, (B, N), dtype=jnp.float32)

    ref = _reference_loss_sm(pred_wave, ref_wave)

    # Default f32 path: matches torch.fft.rfft semantics.
    loss = loss_sm(pred_wave, ref_wave)
    jax.block_until_ready(loss)
    np.testing.assert_allclose(np.asarray(loss), np.asarray(ref),
                               rtol=1e-4, atol=1e-4)

    # Ragged shapes exercise the row / K / frequency zero-padding paths.
    B2, N2 = 3, 100
    p2 = jax.random.normal(jax.random.PRNGKey(1), (B2, N2), dtype=jnp.float32)
    r2 = jax.random.normal(jax.random.PRNGKey(2), (B2, N2), dtype=jnp.float32)
    ref2 = _reference_loss_sm(p2, r2)
    loss2 = loss_sm(p2, r2)
    jax.block_until_ready(loss2)
    np.testing.assert_allclose(np.asarray(loss2), np.asarray(ref2),
                               rtol=1e-3, atol=1e-4)

    # Fast path: bf16 operands, f32 MXU accumulation (~3x matmul rate, half
    # the basis HBM traffic).  Slightly looser tolerance.
    loss_bf16 = loss_sm(pred_wave, ref_wave, compute_dtype=jnp.bfloat16)
    jax.block_until_ready(loss_bf16)
    np.testing.assert_allclose(np.asarray(loss_bf16), np.asarray(ref),
                               rtol=1e-2, atol=1e-2)

    print("KERNEL_OK")
</pallas_src>

<mosaic_0001>
module attributes {stable_mosaic.version = 11 : i64} {
  func.func @_loss_sm_kernel(%arg0: i32, %arg1: i32, %arg2: memref<16x128xf32, #tpu.memory_space<vmem>>, %arg3: memref<128x256xf32, #tpu.memory_space<vmem>>, %arg4: memref<1x1xf32, #tpu.memory_space<smem>>, %arg5: memref<16x256xf32, #tpu.memory_space<vmem>>, %arg6: memref<1xf32, #tpu.memory_space<smem>>) attributes {dimension_semantics = [#tpu.dimension_semantics<arbitrary>, #tpu.dimension_semantics<arbitrary>], iteration_bounds = array<i64: 1, 1>, scalar_prefetch = 0 : i64, scratch_operands = 2 : i64, tpu.core_type = #tpu.core_type<tc>, window_params = [{transform_indices = @transform_0, window_bounds = array<i64: 16, 128>}, {transform_indices = @transform_1, window_bounds = array<i64: 128, 256>}, {transform_indices = @transform_2, window_bounds = array<i64: 1, 1>}]} {
    %c0_i32 = arith.constant 0 : i32
    %0 = arith.cmpi eq, %arg0, %c0_i32 : i32
    %c0_i32_0 = arith.constant 0 : i32
    %1 = arith.cmpi eq, %arg1, %c0_i32_0 : i32
    %2 = arith.andi %0, %1 : i1
    %3 = arith.extui %2 : i1 to i32
    %c0_i32_1 = arith.constant 0 : i32
    %4 = arith.cmpi ne, %3, %c0_i32_1 : i32
    scf.if %4 {
      %cst_16 = arith.constant 0.000000e+00 : f32
      %c0_17 = arith.constant 0 : index
      %22 = memref.load %arg6[%c0_17] : memref<1xf32, #tpu.memory_space<smem>>
      memref.store %cst_16, %arg6[%c0_17] : memref<1xf32, #tpu.memory_space<smem>>
    } else {
    }
    %c0_i32_2 = arith.constant 0 : i32
    %5 = arith.cmpi eq, %arg1, %c0_i32_2 : i32
    %6 = arith.extui %5 : i1 to i32
    %c0_i32_3 = arith.constant 0 : i32
    %7 = arith.cmpi ne, %6, %c0_i32_3 : i32
    scf.if %7 {
      %cst_16 = arith.constant 0.000000e+00 : f32
      %22 = vector.broadcast %cst_16 : f32 to vector<16x256xf32>
      %c0_17 = arith.constant 0 : index
      %c0_18 = arith.constant 0 : index
      %23 = vector.load %arg5[%c0_17, %c0_18] : memref<16x256xf32, #tpu.memory_space<vmem>>, vector<16x256xf32>
      tpu.vector_store %arg5[%c0_17, %c0_18], %22 {strides = array<i32>} : memref<16x256xf32, #tpu.memory_space<vmem>>, vector<16x256xf32>,
    } else {
    }
    %c0 = arith.constant 0 : index
    %c0_4 = arith.constant 0 : index
    %8 = vector.load %arg5[%c0, %c0_4] : memref<16x256xf32, #tpu.memory_space<vmem>>, vector<16x256xf32>
    %c0_5 = arith.constant 0 : index
    %c0_6 = arith.constant 0 : index
    %9 = vector.load %arg2[%c0_5, %c0_6] : memref<16x128xf32, #tpu.memory_space<vmem>>, vector<16x128xf32>
    %c0_7 = arith.constant 0 : index
    %c0_8 = arith.constant 0 : index
    %10 = vector.load %arg3[%c0_7, %c0_8] : memref<128x256xf32, #tpu.memory_space<vmem>>, vector<128x256xf32>
    %cst = arith.constant dense<0.000000e+00> : vector<16x256xf32>
    %11 = tpu.matmul %9, %10, %cst {dimension_numbers = #tpu.dot_dimension_numbers<[1], [0], [0], [1], [0, 0, 1, 1], [], []>} : vector<16x128xf32>, vector<128x256xf32>, vector<16x256xf32> -> vector<16x256xf32>
    %12 = arith.addf %8, %11 : vector<16x256xf32>
    %c0_9 = arith.constant 0 : index
    %c0_10 = arith.constant 0 : index
    %13 = vector.load %arg5[%c0_9, %c0_10] : memref<16x256xf32, #tpu.memory_space<vmem>>, vector<16x256xf32>
    tpu.vector_store %arg5[%c0_9, %c0_10], %12 {strides = array<i32>} : memref<16x256xf32, #tpu.memory_space<vmem>>, vector<16x256xf32>,
    %c0_i32_11 = arith.constant 0 : i32
    %14 = arith.cmpi eq, %arg1, %c0_i32_11 : i32
    %15 = arith.extui %14 : i1 to i32
    %c0_i32_12 = arith.constant 0 : i32
    %16 = arith.cmpi ne, %15, %c0_i32_12 : i32
    scf.if %16 {
      %c0_16 = arith.constant 0 : index
      %c0_17 = arith.constant 0 : index
      %22 = vector.load %arg5[%c0_16, %c0_17] : memref<16x256xf32, #tpu.memory_space<vmem>>, vector<16x256xf32>
      %23 = vector.extract_strided_slice %22 {offsets = [0, 0], sizes = [8, 256], strides = [1, 1]} : vector<16x256xf32> to vector<8x256xf32>
      %24 = math.absf %23 : vector<8x256xf32>
      %25 = vector.extract_strided_slice %22 {offsets = [8, 0], sizes = [8, 256], strides = [1, 1]} : vector<16x256xf32> to vector<8x256xf32>
      %26 = math.absf %25 : vector<8x256xf32>
      %27 = arith.subf %24, %26 : vector<8x256xf32>
      %28 = math.absf %27 : vector<8x256xf32>
      %c0_18 = arith.constant 0 : index
      %29 = memref.load %arg6[%c0_18] : memref<1xf32, #tpu.memory_space<smem>>
      %30 = vector.shape_cast %28 : vector<8x256xf32> to vector<1x8x256xf32>
      %cst_19 = arith.constant dense<0.000000e+00> : vector<1xf32>
      %31 = vector.multi_reduction <add>, %30, %cst_19 [1, 2] : vector<1x8x256xf32> to vector<1xf32>
      %32 = vector.shape_cast %31 : vector<1xf32> to vector<1x1x1xf32>
      %33 = vector.extract %32[0, 0, 0] : f32 from vector<1x1x1xf32>
      %34 = arith.addf %29, %33 : f32
      %c0_20 = arith.constant 0 : index
      %35 = memref.load %arg6[%c0_20] : memref<1xf32, #tpu.memory_space<smem>>
      memref.store %34, %arg6[%c0_20] : memref<1xf32, #tpu.memory_space<smem>>
    } else {
    }
    %c0_i32_13 = arith.constant 0 : i32
    %17 = arith.cmpi eq, %arg0, %c0_i32_13 : i32
    %c0_i32_14 = arith.constant 0 : i32
    %18 = arith.cmpi eq, %arg1, %c0_i32_14 : i32
    %19 = arith.andi %17, %18 : i1
    %20 = arith.extui %19 : i1 to i32
    %c0_i32_15 = arith.constant 0 : i32
    %21 = arith.cmpi ne, %20, %c0_i32_15 : i32
    scf.if %21 {
      %c0_16 = arith.constant 0 : index
      %22 = memref.load %arg6[%c0_16] : memref<1xf32, #tpu.memory_space<smem>>
      %cst_17 = arith.constant 9.61538462E-4 : f32
      %23 = arith.mulf %22, %cst_17 : f32
      %c0_18 = arith.constant 0 : index
      %c0_19 = arith.constant 0 : index
      %24 = memref.load %arg4[%c0_18, %c0_19] : memref<1x1xf32, #tpu.memory_space<smem>>
      memref.store %23, %arg4[%c0_18, %c0_19] : memref<1x1xf32, #tpu.memory_space<smem>>
    } else {
    }
    return
  }
  func.func @transform_0(%arg0: i32, %arg1: i32) -> (i32, i32) {
    %c0_i32 = arith.constant 0 : i32
    %c0_i32_0 = arith.constant 0 : i32
    return %c0_i32, %arg1 : i32, i32
  }
  func.func @transform_1(%arg0: i32, %arg1: i32) -> (i32, i32) {
    %c0_i32 = arith.constant 0 : i32
    return %arg1, %arg0 : i32, i32
  }
  func.func @transform_2(%arg0: i32, %arg1: i32) -> (i32, i32) {
    %c0_i32 = arith.constant 0 : i32
    %c0_i32_0 = arith.constant 0 : i32
    %c0_i32_1 = arith.constant 0 : i32
    return %c0_i32, %c0_i32_0 : i32, i32
  }
}

</mosaic_0001>

<bundles_post_ra>
// kernel: loss_sm.1
= control target key start
LH: loop header
LB: loop body
LE: loop exit
PB: predicated region body
PF: predicated region fallthrough
CT: control target
= control target key end

     0   :  { %7 = vsyncpa [#allocation5], 0  ;;  %s295_s0 = inlined_call_operand.vmem [shape: f32[16,128], index: 0, kind: input, shape index: {}]   ;;  %s296_s1 = inlined_call_operand.hbm [shape: f32[128,256], index: 1, kind: input, shape index: {}]   ;;  %s297_s2 = inlined_call_operand.hbm [shape: f32[1,1], index: 2, kind: output, shape index: {}]  }
   0x1   :  { %8 = vsyncpa [#allocation6], 0  ;;  %s15_s11 = sshll.u32 %s296_s1, 4  ;;  %s264_s12 = smov [#allocation4]   ;;  %s16_s11 = int_to_ptr.hbm [resolvable:$true] %s15_s11 }
   0x2   :  { %s17_s13 = sshll.u32 %s264_s12, 4  ;;  %s265_s14 = smov 256   ;;  %s18_s13 = int_to_ptr.vmem [resolvable:$true] %s17_s13 }
   0x3   :  { %s266_s15 = smov 16  }
   0x4   :  { %23 = dma.hbm_to_vmem [thread:$0]  %s16_s11, 4096, %s18_s13, [#allocation5], %s265_s14, %s265_s14, %s266_s15  }
   0x5   :  { %260 = dma.done.wait [#allocation5], 4096  }
   0x6   :  { %261 = vsyncadd [#allocation5], 4294963200  ;;  %v79_v0 = vld [vmem:[#allocation4 + $0xf0] sm:$0xff]  ;;  %v80_v1 = vld [vmem:[#allocation4 + $0xf8] sm:$0xff]  ;;  %s175_s20 = sshll.u32 %s297_s2, 4  ;;  %s267_s23 = smov [#allocation7]   ;;  %s176_s20 = int_to_ptr.hbm [resolvable:$true] %s175_s20 }
   0x7   :  { %v77_v2 = vld [vmem:[#allocation4 + $0xe0] sm:$0xff]  ;;  %186 = vmatpush.msra.mxu2 %v79_v0  ;;  %202 = vmatpush.msra.mxu3 %v80_v1  ;;  %v78_v3 = vld [vmem:[#allocation4 + $0xe8] sm:$0xff]  ;;  %v75_v4 = vld [vmem:[#allocation4 + $0xd0] sm:$0xff] }
   0x8   :  { %v76_v5 = vld [vmem:[#allocation4 + $0xd8] sm:$0xff]  ;;  %81 = vmatpush.msra.mxu0 %v79_v0  ;;  %104 = vmatpush.msra.mxu1 %v80_v1  ;;  %v73_v6 = vld [vmem:[#allocation4 + $0xc0] sm:$0xff]  ;;  %v74_v7 = vld [vmem:[#allocation4 + $0xc8] sm:$0xff] }
   0x9   :  { %187 = vmatpush.msra.mxu2 %v77_v2  ;;  %203 = vmatpush.msra.mxu3 %v78_v3  ;;  %v71_v8 = vld [vmem:[#allocation4 + $0xb0] sm:$0xff]  ;;  %v72_v9 = vld [vmem:[#allocation4 + $0xb8] sm:$0xff]  ;;  %v69_v10 = vld [vmem:[#allocation4 + $0xa0] sm:$0xff] }
   0xa   :  { %82 = vmatpush.msra.mxu0 %v77_v2  ;;  %105 = vmatpush.msra.mxu1 %v78_v3  ;;  %v70_v11 = vld [vmem:[#allocation4 + $0xa8] sm:$0xff]  ;;  %v67_v12 = vld [vmem:[#allocation4 + $0x90] sm:$0xff]  ;;  %v68_v13 = vld [vmem:[#allocation4 + $0x98] sm:$0xff] }
   0xb   :  { %188 = vmatpush.msra.mxu2 %v75_v4  ;;  %204 = vmatpush.msra.mxu3 %v76_v5  ;;  %v65_v14 = vld [vmem:[#allocation4 + $0x80] sm:$0xff]  ;;  %v66_v15 = vld [vmem:[#allocation4 + $0x88] sm:$0xff]  ;;  %v63_v16 = vld [vmem:[#allocation4 + $0x70] sm:$0xff] }
   0xc   :  { %83 = vmatpush.msra.mxu0 %v75_v4  ;;  %106 = vmatpush.msra.mxu1 %v76_v5  ;;  %v64_v17 = vld [vmem:[#allocation4 + $0x78] sm:$0xff]  ;;  %v61_v18 = vld [vmem:[#allocation4 + $0x60] sm:$0xff]  ;;  %v62_v19 = vld [vmem:[#allocation4 + $0x68] sm:$0xff] }
   0xd   :  { %189 = vmatpush.msra.mxu2 %v73_v6  ;;  %205 = vmatpush.msra.mxu3 %v74_v7  ;;  %v59_v20 = vld [vmem:[#allocation4 + $0x50] sm:$0xff]  ;;  %v60_v21 = vld [vmem:[#allocation4 + $0x58] sm:$0xff]  ;;  %v57_v22 = vld [vmem:[#allocation4 + $0x40] sm:$0xff] }
   0xe   :  { %84 = vmatpush.msra.mxu0 %v73_v6  ;;  %107 = vmatpush.msra.mxu1 %v74_v7  ;;  %v58_v23 = vld [vmem:[#allocation4 + $0x48] sm:$0xff]  ;;  %v55_v24 = vld [vmem:[#allocation4 + $0x30] sm:$0xff]  ;;  %v56_v25 = vld [vmem:[#allocation4 + $0x38] sm:$0xff] }
   0xf   :  { %190 = vmatpush.msra.mxu2 %v71_v8  ;;  %206 = vmatpush.msra.mxu3 %v72_v9  ;;  %v53_v26 = vld [vmem:[#allocation4 + $0x20] sm:$0xff]  ;;  %v54_v27 = vld [vmem:[#allocation4 + $0x28] sm:$0xff]  ;;  %v51_v28 = vld [vmem:[#allocation4 + $0x10] sm:$0xff] }
  0x10   :  { %85 = vmatpush.msra.mxu0 %v71_v8  ;;  %108 = vmatpush.msra.mxu1 %v72_v9  ;;  %v52_v29 = vld [vmem:[#allocation4 + $0x18] sm:$0xff]  ;;  %v49_v30 = vld [vmem:[#allocation4] sm:$0xff]  ;;  %v50_v31 = vld [vmem:[#allocation4 + $0x8] sm:$0xff] }
  0x11   :  { %191 = vmatpush.msra.mxu2 %v69_v10  ;;  %207 = vmatpush.msra.mxu3 %v70_v11  ;;  %v48_v32 = vld [vmem:[%s295_s0 + $0x8] sm:$0xff]  ;;  %v47_v33 = vld [vmem:[%s295_s0] sm:$0xff] }
  0x12   :  { %86 = vmatpush.msra.mxu0 %v69_v10  ;;  %109 = vmatpush.msra.mxu1 %v70_v11 }
  0x13   :  { %192 = vmatpush.msra.mxu2 %v67_v12  ;;  %208 = vmatpush.msra.mxu3 %v68_v13 }
  0x14   :  { %87 = vmatpush.msra.mxu0 %v67_v12  ;;  %110 = vmatpush.msra.mxu1 %v68_v13 }
  0x15   :  { %193 = vmatpush.msra.mxu2 %v65_v14  ;;  %209 = vmatpush.msra.mxu3 %v66_v15 }
  0x16   :  { %88 = vmatpush.msra.mxu0 %v65_v14  ;;  %111 = vmatpush.msra.mxu1 %v66_v15 }
  0x17   :  { %194 = vmatpush.msra.mxu2 %v63_v16  ;;  %210 = vmatpush.msra.mxu3 %v64_v17 }
  0x18   :  { %89 = vmatpush.msra.mxu0 %v63_v16  ;;  %112 = vmatpush.msra.mxu1 %v64_v17 }
  0x19   :  { %195 = vmatpush.msra.mxu2 %v61_v18  ;;  %211 = vmatpush.msra.mxu3 %v62_v19 }
  0x1a   :  { %90 = vmatpush.msra.mxu0 %v61_v18  ;;  %113 = vmatpush.msra.mxu1 %v62_v19 }
  0x1b   :  { %196 = vmatpush.msra.mxu2 %v59_v20  ;;  %212 = vmatpush.msra.mxu3 %v60_v21 }
  0x1c   :  { %91 = vmatpush.msra.mxu0 %v59_v20  ;;  %114 = vmatpush.msra.mxu1 %v60_v21 }
  0x1d   :  { %197 = vmatpush.msra.mxu2 %v57_v22  ;;  %213 = vmatpush.msra.mxu3 %v58_v23 }
  0x1e   :  { %92 = vmatpush.msra.mxu0 %v57_v22  ;;  %115 = vmatpush.msra.mxu1 %v58_v23 }
  0x1f   :  { %198 = vmatpush.msra.mxu2 %v55_v24  ;;  %214 = vmatpush.msra.mxu3 %v56_v25 }
  0x20   :  { %93 = vmatpush.msra.mxu0 %v55_v24  ;;  %116 = vmatpush.msra.mxu1 %v56_v25 }
  0x21   :  { %199 = vmatpush.msra.mxu2 %v53_v26  ;;  %215 = vmatpush.msra.mxu3 %v54_v27 }
  0x22   :  { %94 = vmatpush.msra.mxu0 %v53_v26  ;;  %117 = vmatpush.msra.mxu1 %v54_v27 }
  0x23   :  { %200 = vmatpush.msra.mxu2 %v51_v28  ;;  %216 = vmatpush.msra.mxu3 %v52_v29 }
  0x24   :  { %95 = vmatpush.msra.mxu0 %v51_v28  ;;  %118 = vmatpush.msra.mxu1 %v52_v29 }
  0x25   :  { %201 = vmatpush.msra.mxu2 %v49_v30  ;;  %217 = vmatpush.msra.mxu3 %v50_v31 }
  0x26   :  { %100 = vmatmul.f32.vlgmr.msra.gmra.mxu2 %v48_v32  ;;  %123 = vmatmul.f32.vlgmr.msra.gmra.mxu3 %v48_v32 }
  0x27   :  { %96 = vmatpush.msra.mxu0 %v49_v30  ;;  %119 = vmatpush.msra.mxu1 %v50_v31 }
  0x28   :  { %97 = vmatmul.f32.vlgmr.msra.gmra.mxu0 %v47_v33  ;;  %120 = vmatmul.f32.vlgmr.msra.gmra.mxu1 %v47_v33 }
  0xa5   :  { %v98_v34 = vpop.f32.mrf.mxu0  ;;  %v121_v35 = vpop.f32.mrf.mxu1 }
  0xa6   :  { %v142_v36 = vand.u32 2147483647, %v98_v34  ;;  %v143_v37 = vand.u32 2147483647, %v121_v35 }
  0xa9   :  { %v101_v38 = vpop.f32.mrf.mxu2  ;;  %v124_v39 = vpop.f32.mrf.mxu3 }
  0xaa   :  { %v144_v40 = vand.u32 2147483647, %v101_v38  ;;  %v145_v41 = vand.u32 2147483647, %v124_v39 }
  0xac   :  { %v146_v42 = vsub.f32 %v142_v36, %v144_v40  ;;  %v147_v43 = vsub.f32 %v143_v37, %v145_v41 }
  0xae   :  { %v148_v44 = vand.u32 2147483647, %v146_v42  ;;  %v149_v45 = vand.u32 2147483647, %v147_v43 }
  0xb0   :  { %v151_v46 = vadd.f32 %v149_v45, %v148_v44 }
  0xb2   :  { %152 = vadd.xlane.f32.xlu0 %v151_v46 }
 0x125   :  { %v153_v47 = vpop.xlane.xlu0 %152 }
 0x126   :  { %v154_v48 = vrot.slane %v153_v47, 4 }
 0x128   :  { %v155_v49 = vadd.f32 %v154_v48, %v153_v47 }
 0x12a   :  { %v156_v50 = vrot.slane %v155_v49, 2 }
 0x12c   :  { %v157_v51 = vadd.f32 %v156_v50, %v155_v49 }
 0x12e   :  { %v158_v52 = vrot.slane %v157_v51, 1 }
 0x130   :  { %v159_v53 = vadd.f32 %v158_v52, %v157_v51 }
 0x132   :  { %218 = vpush %v159_v53 }
 0x163   :  { %s219_s21 = spop %218 }
 0x164   :  { %s167_s22 = smul.f32 0.00096153846, %s219_s21 }
 0x166   :  { %169 = sst [smem:[#allocation7]] %s167_s22 }
 0x167   :  { %178 = dma.smem_to_hbm %s267_s23, 16, %s176_s20, [#allocation6]  }
 0x168   :  { %262 = dma.done.wait [#allocation6], 16  }
 0x169   :  { %263 = vsyncadd [#allocation6], 4294967280 }
 0x16a   :  { %183 = sfence }
 0x16b   :  { %184 = vsyncpa [#allocation5], 1 }
 0x16c   :  { %185 = vsyncpa [#allocation6], 1 }

</bundles_post_ra>
